<compile_context>
chip_gen: v5e
topology: v5e:2x2
jax: 0.10.0
libtpu: 0.0.40
codegen_flags: <defaults>
</compile_context>

<pallas_src>
import functools

import jax
import jax.numpy as jnp
from jax import lax
from jax.experimental import pallas as pl
from jax.experimental.pallas import tpu as pltpu

_LANE = 128


def _round_up(n, m):
    return ((n + m - 1) // m) * m


def _activation(h, name):
    if name == "tanh":
        return jnp.tanh(h)
    return jnp.maximum(h, 0.0)  # 'relu' / default (matches the torch module)


def _make_kernel(num_hidden, activation):
    """Fused MLP kernel. x block is (tB, input_size) batch-major as it arrives
    from HBM; all compute is feature-major (out_l, tB); output block is a
    lane-dense (1, tB) tile."""

    def kernel(*refs):
        # refs = (x, W1, b1, ..., WH, bH, w_out_row, b_out, out)
        x_ref, out_ref = refs[0], refs[-1]
        wb = refs[1:-1]

        x = x_ref[...]
        if x.dtype != jnp.float32:
            x = x.astype(jnp.float32)

        if num_hidden > 0:
            # First layer: contract the feature axis of the batch-major x
            # block -> feature-major (out_0, tB). Equivalent to W0 @ x.T but
            # without materializing a transpose.
            w0 = wb[0][...]            # (out_0, in)
            b0 = wb[1][...]            # (out_0, 1)
            h = lax.dot_general(w0, x, (((1,), (1,)), ((), ())),
                                preferred_element_type=jnp.float32)
            h = _activation(h + b0, activation)
            for l in range(1, num_hidden):
                w = wb[2 * l][...]     # (out_l, in_l)
                b = wb[2 * l + 1][...]  # (out_l, 1)
                h = jnp.dot(w, h, preferred_element_type=jnp.float32)
                h = _activation(h + b, activation)
            w_row = wb[-2][...]        # (1, prev)
            b_out = wb[-1][...]        # (1, 1)
            # (1, prev) @ (prev, tB) -> (1, tB): already lane-major, the store
            # below is a full-lane vst (when tB is a multiple of 128).
            y = jnp.dot(w_row, h, preferred_element_type=jnp.float32) + b_out
        else:
            w_row = wb[-2][...]        # (1, input_size)
            b_out = wb[-1][...]        # (1, 1)
            y = lax.dot_general(w_row, x, (((1,), (1,)), ((), ())),
                                preferred_element_type=jnp.float32) + b_out

        out_ref[...] = y.astype(out_ref.dtype)

    return kernel


def _pick_batch_tile(B, input_size, batch_tile):
    """Pick a batch tile: multiple of 128 (lane-dense output store), >= 2 grid
    steps (v7x megacore can split the 'parallel' batch axis across its 2 TCs),
    capped so the double-buffered, lane-padded x tile stays <= ~8 MiB (no
    vmem_limit_bytes tuning needed even on v7x's 64 MiB VMEM)."""
    padded_in = _round_up(input_size, _LANE)
    vmem_cap_tile = (8 << 20) // (padded_in * 4 * 2)
    vmem_cap_tile = max(_LANE, (vmem_cap_tile // _LANE) * _LANE)
    tB = min(batch_tile, _round_up(pl.cdiv(B, 2), _LANE), vmem_cap_tile)
    return max(tB, _LANE)


def mlp_forward(x, weights, biases, activation="relu", *, batch_tile=4096):
    """Fused MLP forward.

    x       : (B, input_size) float32
    weights : list of (out_l, in_l) float32 arrays (torch nn.Linear layout;
              the last one has out_l = 1)
    biases  : list of (out_l,) float32 arrays
    Returns : (B,) float32.
    """
    assert len(weights) == len(biases)
    num_hidden = len(weights) - 1
    B, input_size = x.shape

    operands = [x]
    for l in range(num_hidden):
        operands.append(weights[l].astype(jnp.float32))                  # (out_l, in_l)
        operands.append(biases[l].reshape(-1, 1).astype(jnp.float32))    # (out_l, 1)
    operands.append(weights[-1].reshape(1, -1).astype(jnp.float32))      # (1, prev)
    operands.append(biases[-1].reshape(1, 1).astype(jnp.float32))        # (1, 1)

    kernel = _make_kernel(num_hidden, activation)

    if B <= 512:
        # Tiny problem: one whole-array call, no grid/pipeline machinery
        # (skips the per-step ~0.35 us overhead entirely).
        vmem = pltpu.MemorySpace.VMEM
        y = pl.pallas_call(
            kernel,
            out_shape=jax.ShapeDtypeStruct((1, B), jnp.float32),
            in_specs=[pl.BlockSpec(memory_space=vmem) for _ in operands],
            out_specs=pl.BlockSpec(memory_space=vmem),
        )(*operands)
        return y.reshape(B)

    # Batch-tiled path: stream x over B with a cdiv grid (last tile masked by
    # Pallas OOB handling), weights/biases resident in VMEM, lane-dense
    # (1, tB) output tiles, batch axis parallel for megacore.
    tB = _pick_batch_tile(B, input_size, batch_tile)
    grid = (pl.cdiv(B, tB),)

    in_specs = [pl.BlockSpec((tB, input_size), lambda i: (i, 0))]
    for op in operands[1:]:
        # Full-array block + constant index_map -> stays pinned in VMEM, no
        # per-step DMA.
        in_specs.append(pl.BlockSpec(op.shape, lambda i: (0, 0)))
    out_specs = pl.BlockSpec((1, tB), lambda i: (0, i))

    y = pl.pallas_call(
        kernel,
        out_shape=jax.ShapeDtypeStruct((1, B), jnp.float32),
        grid=grid,
        in_specs=in_specs,
        out_specs=out_specs,
        compiler_params=pltpu.CompilerParams(
            dimension_semantics=("parallel",)),
    )(*operands)
    return y.reshape(B)


def init_mlp_params(key, input_size, hidden_sizes):
    """nn.Linear default init: U(-1/sqrt(fan_in), 1/sqrt(fan_in)) for W and b.
    Weights in torch layout (out, in); biases (out,)."""
    sizes = [input_size] + list(hidden_sizes) + [1]
    weights, biases = [], []
    for i in range(len(sizes) - 1):
        fan_in, fan_out = sizes[i], sizes[i + 1]
        key, kw, kb = jax.random.split(key, 3)
        bound = 1.0 / jnp.sqrt(jnp.float32(fan_in))
        w = jax.random.uniform(kw, (fan_out, fan_in), jnp.float32, -bound, bound)
        b = jax.random.uniform(kb, (fan_out,), jnp.float32, -bound, bound)
        weights.append(w)
        biases.append(b)
    return weights, biases


def mlp_reference(x, weights, biases, activation="relu"):
    """Pure-JAX reference (torch-equivalent) for correctness check."""
    h = x
    for i, (w, b) in enumerate(zip(weights, biases)):
        h = h @ w.T + b
        if i < len(weights) - 1:
            h = jnp.tanh(h) if activation == "tanh" else jnp.maximum(h, 0.0)
    return jnp.squeeze(h, axis=-1)


if __name__ == "__main__":
    key = jax.random.PRNGKey(0)

    input_size = 16
    hidden_sizes = [32, 32]

    key, kparam = jax.random.split(key)
    weights, biases = init_mlp_params(kparam, input_size, hidden_sizes)

    fwd_relu = jax.jit(functools.partial(mlp_forward, activation="relu"))
    fwd_tanh = jax.jit(functools.partial(mlp_forward, activation="tanh"))

    # --- Test 1: tiny batch -> no-grid whole-array path (relu) ---
    key, kx = jax.random.split(key)
    x_small = jax.random.normal(kx, (8, input_size), jnp.float32)
    out = jax.block_until_ready(fwd_relu(x_small, weights, biases))
    ref = mlp_reference(x_small, weights, biases, "relu")
    assert out.shape == (8,), out.shape
    assert jnp.allclose(out, ref, atol=1e-4, rtol=1e-4), (out, ref)

    # --- Test 2: larger batch, exact multiple -> tiled path
    #     (tB = 2048, grid = 2 so v7x megacore can split it), relu ---
    key, kx = jax.random.split(key)
    x_big = jax.random.normal(kx, (4096, input_size), jnp.float32)
    out = jax.block_until_ready(fwd_relu(x_big, weights, biases))
    ref = mlp_reference(x_big, weights, biases, "relu")
    assert out.shape == (4096,), out.shape
    assert jnp.allclose(out, ref, atol=1e-4, rtol=1e-4), (out, ref)

    # --- Test 3: non-multiple batch -> cdiv grid with masked last tile, tanh ---
    key, kx = jax.random.split(key)
    x_odd = jax.random.normal(kx, (3000, input_size), jnp.float32)
    out = jax.block_until_ready(fwd_tanh(x_odd, weights, biases))
    ref = mlp_reference(x_odd, weights, biases, "tanh")
    assert out.shape == (3000,), out.shape
    assert jnp.allclose(out, ref, atol=1e-4, rtol=1e-4), (out, ref)

    print("KERNEL_OK")
</pallas_src>

<mosaic_0001>
module attributes {stable_mosaic.version = 11 : i64} {
  func.func @kernel(%arg0: memref<8x16xf32, #tpu.memory_space<vmem>>, %arg1: memref<32x16xf32, #tpu.memory_space<vmem>>, %arg2: memref<32x1xf32, #tpu.memory_space<vmem>>, %arg3: memref<32x32xf32, #tpu.memory_space<vmem>>, %arg4: memref<32x1xf32, #tpu.memory_space<vmem>>, %arg5: memref<1x32xf32, #tpu.memory_space<vmem>>, %arg6: memref<1x1xf32, #tpu.memory_space<vmem>>, %arg7: memref<1x8xf32, #tpu.memory_space<vmem>>) attributes {dimension_semantics = [], scalar_prefetch = 0 : i64, scratch_operands = 0 : i64, tpu.core_type = #tpu.core_type<tc>} {
    %c0 = arith.constant 0 : index
    %c0_0 = arith.constant 0 : index
    %0 = vector.load %arg0[%c0, %c0_0] : memref<8x16xf32, #tpu.memory_space<vmem>>, vector<8x16xf32>
    %c0_1 = arith.constant 0 : index
    %c0_2 = arith.constant 0 : index
    %1 = vector.load %arg1[%c0_1, %c0_2] : memref<32x16xf32, #tpu.memory_space<vmem>>, vector<32x16xf32>
    %c0_3 = arith.constant 0 : index
    %c0_4 = arith.constant 0 : index
    %2 = vector.load %arg2[%c0_3, %c0_4] : memref<32x1xf32, #tpu.memory_space<vmem>>, vector<32x1xf32>
    %cst = arith.constant dense<0.000000e+00> : vector<32x8xf32>
    %3 = tpu.matmul %1, %0, %cst {dimension_numbers = #tpu.dot_dimension_numbers<[1], [1], [0], [0], [0, 0, 1, 0], [], []>} : vector<32x16xf32>, vector<8x16xf32>, vector<32x8xf32> -> vector<32x8xf32>
    %4 = vector.broadcast %2 : vector<32x1xf32> to vector<32x8xf32>
    %5 = arith.addf %3, %4 : vector<32x8xf32>
    %cst_5 = arith.constant 0.000000e+00 : f32
    %6 = vector.broadcast %cst_5 : f32 to vector<32x8xf32>
    %7 = arith.maximumf %5, %6 : vector<32x8xf32>
    %c0_6 = arith.constant 0 : index
    %c0_7 = arith.constant 0 : index
    %8 = vector.load %arg3[%c0_6, %c0_7] : memref<32x32xf32, #tpu.memory_space<vmem>>, vector<32x32xf32>
    %c0_8 = arith.constant 0 : index
    %c0_9 = arith.constant 0 : index
    %9 = vector.load %arg4[%c0_8, %c0_9] : memref<32x1xf32, #tpu.memory_space<vmem>>, vector<32x1xf32>
    %cst_10 = arith.constant dense<0.000000e+00> : vector<32x8xf32>
    %10 = tpu.matmul %8, %7, %cst_10 {dimension_numbers = #tpu.dot_dimension_numbers<[1], [0], [0], [1], [0, 0, 1, 1], [], []>} : vector<32x32xf32>, vector<32x8xf32>, vector<32x8xf32> -> vector<32x8xf32>
    %11 = vector.broadcast %9 : vector<32x1xf32> to vector<32x8xf32>
    %12 = arith.addf %10, %11 : vector<32x8xf32>
    %cst_11 = arith.constant 0.000000e+00 : f32
    %13 = vector.broadcast %cst_11 : f32 to vector<32x8xf32>
    %14 = arith.maximumf %12, %13 : vector<32x8xf32>
    %c0_12 = arith.constant 0 : index
    %c0_13 = arith.constant 0 : index
    %15 = vector.load %arg5[%c0_12, %c0_13] : memref<1x32xf32, #tpu.memory_space<vmem>>, vector<1x32xf32>
    %c0_14 = arith.constant 0 : index
    %c0_15 = arith.constant 0 : index
    %16 = vector.load %arg6[%c0_14, %c0_15] : memref<1x1xf32, #tpu.memory_space<vmem>>, vector<1x1xf32>
    %cst_16 = arith.constant dense<0.000000e+00> : vector<1x8xf32>
    %17 = tpu.matmul %15, %14, %cst_16 {dimension_numbers = #tpu.dot_dimension_numbers<[1], [0], [0], [1], [0, 0, 1, 1], [], []>} : vector<1x32xf32>, vector<32x8xf32>, vector<1x8xf32> -> vector<1x8xf32>
    %18 = vector.broadcast %16 : vector<1x1xf32> to vector<1x8xf32>
    %19 = arith.addf %17, %18 : vector<1x8xf32>
    %c0_17 = arith.constant 0 : index
    %c0_18 = arith.constant 0 : index
    %20 = vector.load %arg7[%c0_17, %c0_18] : memref<1x8xf32, #tpu.memory_space<vmem>>, vector<1x8xf32>
    tpu.vector_store %arg7[%c0_17, %c0_18], %19 {strides = array<i32>} : memref<1x8xf32, #tpu.memory_space<vmem>>, vector<1x8xf32>,
    return
  }
}

</mosaic_0001>

<bundles_post_ra>
// kernel: mlp_forward.1
= control target key start
LH: loop header
LB: loop body
LE: loop exit
PB: predicated region body
PF: predicated region fallthrough
CT: control target
= control target key end

     0   :  { %s393_s0 = inlined_call_operand.vmem [shape: f32[8,16], index: 0, kind: input, shape index: {}]   ;;  %s394_s1 = inlined_call_operand.vmem [shape: f32[32,16], index: 1, kind: input, shape index: {}]   ;;  %s395_s2 = inlined_call_operand.vmem [shape: f32[32,1], index: 2, kind: input, shape index: {}]   ;;  %s396_s3 = inlined_call_operand.vmem [shape: f32[32,32], index: 3, kind: input, shape index: {}]   ;;  %s397_s4 = inlined_call_operand.vmem [shape: f32[32,1], index: 4, kind: input, shape index: {}]   ;;  %s398_s5 = inlined_call_operand.vmem [shape: f32[1,32], index: 5, kind: input, shape index: {}]   ;;  %s399_s6 = inlined_call_operand.<no memory space> [shape: f32[1,1], index: 6, kind: input, shape index: {}]   ;;  %s400_s7 = inlined_call_operand.hbm [shape: f32[1,8], index: 7, kind: output, shape index: {}]  }
   0x1   :  { %v12_v0 = vstv %s399_s6 }
   0x2   :  { %13 = vst [vmem:[#allocation2] sm:$0x1] %v12_v0 }
   0x3   :  { %v29_v1 = vld [vmem:[%s393_s0] sm:$0xff]  ;;  %vm58_vm0 = vcmask 130048   ;;  %v37_v2 = vld [vmem:[%s395_s2 + $0x18] sm:$0xff]  ;;  %v280_v4 = vmov 0   ;;  %v35_v5 = vld [vmem:[%s395_s2 + $0x8] sm:$0xff] }
   0x4   :  { %230 = vmatpush.xpose.msk.msra.mxu0 %vm58_vm0, %v29_v1  ;;  %v30_v3 = vld [vmem:[%s394_s1] sm:$0xff]  ;;  %252 = vset.pattern.permute.xlu1 %v280_v4  ;;  %v33_v6 = vld [vmem:[%s394_s1 + $0x18] sm:$0xff] }
   0x5   :  { %251 = vset.pattern.permute.xlu0 %v280_v4  ;;  %45 = vperm.xlu1 %252, %v35_v5  }
   0x6   :  { %55 = vperm.xlu0 %251, %v37_v2   ;;  %240 = vmatpush.xpose.msk.msra.mxu1 %vm58_vm0, %v29_v1 }
   0x7   :  { %14 = vsyncpa [#allocation4], 0  ;;  %231 = vmatmul.msk.f32.vlgmr.msra.gmra.mxu0 %vm58_vm0, %v30_v3  ;;  %253 = vset.pattern.permute.xlu2 %v280_v4  ;;  %v34_v7 = vld [vmem:[%s395_s2] sm:$0xff]  ;;  %v36_v8 = vld [vmem:[%s395_s2 + $0x10] sm:$0xff]  ;;  %vm135_vm1 = vcmask 261120   ;;  %s281_s6 = smov [#allocation3]  }
   0x8   :  { %v31_v9 = vld [vmem:[%s394_s1 + $0x8] sm:$0xff]  ;;  %v111_v10 = vld [vmem:[%s397_s4] sm:$0xff]  ;;  %v32_v12 = vld [vmem:[%s394_s1 + $0x10] sm:$0xff]  ;;  %s219_s0 = sshll.u32 %s281_s6, 4  ;;  %s221_s12 = sshll.u32 %s400_s7, 4  ;;  %vm212_vm2 = vcmask 57344   ;;  %s220_s0 = int_to_ptr.vmem [resolvable:$true] %s219_s0  ;;  %s222_s12 = int_to_ptr.hbm [resolvable:$true] %s221_s12 }
   0x9   :  { %234 = vmatmul.msk.f32.vlgmr.msra.gmra.mxu1 %vm58_vm0, %v33_v6  ;;  %v112_v11 = vld [vmem:[%s397_s4 + $0x8] sm:$0xff]  ;;  %v114_v17 = vld [vmem:[%s397_s4 + $0x18] sm:$0xff]  ;;  %v113_v21 = vld [vmem:[%s397_s4 + $0x10] sm:$0xff] }
   0xa   :  { %132 = vperm.xlu2 %253, %v114_v17   ;;  %v182_v27 = vld [vmem:[#allocation2] sm:$0x1]  ;;  %v108_v33 = vld [vmem:[%s396_s3 + $0x8] sm:$0xff]  ;;  %v109_v34 = vld [vmem:[%s396_s3 + $0x10] sm:$0xff] }
   0xb   :  { %v107_v32 = vld [vmem:[%s396_s3] sm:$0xff]  ;;  %v110_v35 = vld [vmem:[%s396_s3 + $0x18] sm:$0xff] }
   0xc   :  { %v181_v52 = vld [vmem:[%s398_s5] sm:$0x1] }
   0xd   :  { %40 = vperm.xlu1 %252, %v34_v7  }
   0xe   :  { %50 = vperm.xlu0 %251, %v36_v8  }
   0xf   :  { %232 = vmatmul.msk.f32.gmra.mxu0 %vm58_vm0, %v31_v9 }
  0x12   :  { %127 = vperm.xlu2 %253, %v113_v21  }
  0x15   :  { %117 = vperm.xlu1 %252, %v111_v10  }
  0x16   :  { %122 = vperm.xlu0 %251, %v112_v11  }
  0x17   :  { %233 = vmatmul.msk.f32.gmra.mxu0 %vm58_vm0, %v32_v12 }
  0x1a   :  { %185 = vperm.xlu2 %253, %v182_v27  }
  0x64   :  { %v133_v36 = vpop.permute.xlu2 %132 }
  0x6c   :  { %v128_v38 = vpop.permute.xlu2 %127 }
  0x74   :  { %v186_v53 = vpop.permute.xlu2 %185 }
  0x75   :  { %v188_v54 = vperm.slane %v186_v53, 0 }
  0x77   :  { %v46_v18 = vpop.permute.xlu1 %45 }
  0x78   :  { %v56_v14 = vpop.permute.xlu0 %55 }
  0x7f   :  { %v41_v22 = vpop.permute.xlu1 %40 }
  0x80   :  { %v51_v23 = vpop.permute.xlu0 %50 }
  0x84   :  { %v91_v13 = vpop.f32.mrf.mxu0 }
  0x85   :  { %v92_v28 = vadd.f32 %v91_v13, %v41_v22 }
  0x86   :  { %v100_v15 = vpop.f32.mrf.mxu1 }
  0x87   :  { %v101_v16 = vadd.f32 %v100_v15, %v56_v14  ;;  %v103_v31 = vmax.f32 %v92_v28, 0.0  ;;  %v118_v47 = vpop.permute.xlu1 %117 }
  0x88   :  { %v123_v43 = vpop.permute.xlu0 %122 }
  0x89   :  { %v106_v19 = vmax.f32 %v101_v16, 0.0 }
  0x8b   :  { %160 = vmatpush.msrb.mxu1 %v106_v19  ;;  %241 = vmatpush.msra.mxu2 %v106_v19 }
  0x8c   :  { %v94_v20 = vpop.f32.mrf.mxu0  ;;  %242 = vmatpush.msra.mxu3 %v106_v19 }
  0x8d   :  { %v95_v25 = vadd.f32 %v94_v20, %v46_v18 }
  0x8f   :  { %v104_v30 = vmax.f32 %v95_v25, 0.0 }
  0x94   :  { %v97_v24 = vpop.f32.mrf.mxu0 }
  0x95   :  { %v98_v26 = vadd.f32 %v97_v24, %v51_v23 }
  0x97   :  { %v105_v29 = vmax.f32 %v98_v26, 0.0 }
  0x99   :  { %161 = vmatpush.msrb.mxu1 %v105_v29  ;;  %243 = vmatpush.msra.mxu2 %v105_v29 }
  0x9a   :  { %244 = vmatpush.msra.mxu3 %v105_v29 }
  0x9b   :  { %162 = vmatpush.msrb.mxu1 %v104_v30  ;;  %245 = vmatpush.msra.mxu2 %v104_v30 }
  0x9c   :  { %246 = vmatpush.msra.mxu3 %v104_v30 }
  0x9d   :  { %163 = vmatpush.msrb.mxu1 %v103_v31  ;;  %247 = vmatpush.msra.mxu2 %v103_v31 }
  0x9e   :  { %248 = vmatpush.msra.mxu3 %v103_v31  ;;  %235 = vmatmul.msk.f32.vlgmr.msrb.gmra.mxu1 %vm135_vm1, %v107_v32 }
  0x9f   :  { %236 = vmatmul.msk.f32.vlgmr.msra.gmra.mxu2 %vm135_vm1, %v108_v33  ;;  %237 = vmatmul.msk.f32.vlgmr.msra.gmra.mxu3 %vm135_vm1, %v109_v34 }
  0xa7   :  { %238 = vmatmul.msk.f32.gmra.mxu3 %vm135_vm1, %v110_v35 }
 0x11b   :  { %v165_v44 = vpop.f32.mrf.mxu1 }
 0x11c   :  { %v166_v48 = vadd.f32 %v165_v44, %v118_v47 }
 0x11e   :  { %v177_v51 = vmax.f32 %v166_v48, 0.0 }
 0x122   :  { %v171_v37 = vpop.f32.mrf.mxu3  ;;  %v168_v39 = vpop.f32.mrf.mxu2 }
 0x123   :  { %v172_v41 = vadd.f32 %v171_v37, %v128_v38  ;;  %v169_v45 = vadd.f32 %v168_v39, %v123_v43 }
 0x125   :  { %v179_v49 = vmax.f32 %v172_v41, 0.0  ;;  %v178_v50 = vmax.f32 %v169_v45, 0.0 }
 0x12a   :  { %v174_v40 = vpop.f32.mrf.mxu3 }
 0x12b   :  { %v175_v42 = vadd.f32 %v174_v40, %v133_v36 }
 0x12d   :  { %v180_v46 = vmax.f32 %v175_v42, 0.0 }
 0x12f   :  { %204 = vmatpush.msrb.mxu2 %v180_v46 }
 0x131   :  { %205 = vmatpush.msrb.mxu2 %v179_v49 }
 0x133   :  { %206 = vmatpush.msrb.mxu2 %v178_v50 }
 0x135   :  { %207 = vmatpush.msrb.mxu2 %v177_v51 }
 0x136   :  { %239 = vmatmul.msk.f32.vlgmr.msrb.gmra.mxu2 %vm135_vm1, %v181_v52 }
 0x1b9   :  { %v209_v55 = vpop.f32.mrf.mxu2 }
 0x1ba   :  { %v210_v56 = vadd.f32 %v209_v55, %v188_v54 }
 0x1bc   :  { %213 = vst.msk [vmem:[#allocation3] sm:$0x1] %vm212_vm2, %v210_v56 }
 0x1bd   :  { %224 = dma.vmem_to_hbm [thread:$0]  %s220_s0, 16, %s222_s12, [#allocation4]  }
 0x1be   :  { %278 = dma.done.wait [#allocation4], 16  }
 0x1bf   :  { %279 = vsyncadd [#allocation4], 4294967280 }
 0x1c0   :  { %229 = vsyncpa [#allocation4], 1 }

</bundles_post_ra>
